<compile_context>
chip_gen: v5e
topology: v5e:2x2
jax: 0.10.0
libtpu: 0.0.40
codegen_flags: <defaults>
</compile_context>

<pallas_src>
import jax
import jax.numpy as jnp
from jax import lax
from jax.experimental import pallas as pl
from jax.experimental.pallas import tpu as pltpu

BN_EPS = 1e-5
_INV_SQRT2 = 0.7071067811865476  # 1/sqrt(2), precomputed Python float


def _gelu_exact(x):
    # PyTorch nn.GELU() default (approximate='none'): 0.5*x*(1+erf(x/sqrt(2)))
    return 0.5 * x * (1.0 + lax.erf(x * _INV_SQRT2))


def mlp_encoder_kernel(x_ref, w1_ref, b1_ref, w2_ref, b2_ref, w3_ref, b3_ref, o_ref):
    # One batch tile; weights are VMEM-resident across the batch grid.
    x = x_ref[...]  # operand dtype (f32 or bf16); accumulation is f32

    h = jnp.dot(x, w1_ref[...], preferred_element_type=jnp.float32) + b1_ref[...]
    h = _gelu_exact(h)                                  # f32 VPU/EUP work

    h = jnp.dot(h.astype(w2_ref.dtype), w2_ref[...],
                preferred_element_type=jnp.float32) + b2_ref[...]
    h = _gelu_exact(h)

    # Dropout (eval mode) => identity.

    out = jnp.dot(h.astype(w3_ref.dtype), w3_ref[...],
                  preferred_element_type=jnp.float32) + b3_ref[...]
    o_ref[...] = out.astype(o_ref.dtype)


def _round_up(n, m):
    return ((n + m - 1) // m) * m


def _pad2(a, rows, cols):
    return jnp.pad(a, ((0, rows - a.shape[0]), (0, cols - a.shape[1])))


def _fold_batchnorms(params):
    """Fold the two eval-mode BatchNorm1d layers into the following Linear."""
    (w1, b1, g1, be1, m1, v1,
     w2, b2, g2, be2, m2, v2,
     w3, b3) = params
    s1 = g1 * lax.rsqrt(v1 + BN_EPS)        # (1, h)
    t1 = be1 - m1 * s1
    s2 = g2 * lax.rsqrt(v2 + BN_EPS)        # (1, d_out)
    t2 = be2 - m2 * s2
    w2f = w2 * s1.T                         # diag(s1) @ W2
    b2f = t1 @ w2 + b2
    w3f = w3 * s2.T                         # diag(s2) @ W3
    b3f = t2 @ w3 + b3
    return w1, b1, w2f, b2f, w3f, b3f


def mlp_encoder_forward(x, params, *, compute_dtype=jnp.float32, tile_n=256):
    w1, b1, w2f, b2f, w3f, b3f = _fold_batchnorms(params)

    N, d_in = x.shape
    h_dim = w1.shape[1]
    d_out = w3f.shape[1]

    # Pad feature dims to 128 lanes (unmasked stores, full MXU tiles) and the
    # batch to a multiple of the tile. Zero padding is exact: padded input
    # columns multiply zero weight rows, padded hidden/output lanes carry
    # gelu(0) = 0 through and are sliced off at the end.
    d_in_p = _round_up(d_in, 128)
    h_p = _round_up(h_dim, 128)
    d_out_p = _round_up(d_out, 128)
    tile_n = min(tile_n, _round_up(N, 8))
    n_p = _round_up(N, tile_n)

    xp = _pad2(x, n_p, d_in_p).astype(compute_dtype)
    w1p = _pad2(w1, d_in_p, h_p).astype(compute_dtype)
    b1p = _pad2(b1, 1, h_p).astype(jnp.float32)
    w2p = _pad2(w2f, h_p, d_out_p).astype(compute_dtype)
    b2p = _pad2(b2f, 1, d_out_p).astype(jnp.float32)
    w3p = _pad2(w3f, d_out_p, d_out_p).astype(compute_dtype)
    b3p = _pad2(b3f, 1, d_out_p).astype(jnp.float32)

    grid = (n_p // tile_n,)

    def batch_tile(shape):
        return pl.BlockSpec(shape, lambda i: (i, 0))

    def resident(shape):
        return pl.BlockSpec(shape, lambda i: (0, 0))

    in_specs = [
        batch_tile((tile_n, d_in_p)),
        resident((d_in_p, h_p)), resident((1, h_p)),
        resident((h_p, d_out_p)), resident((1, d_out_p)),
        resident((d_out_p, d_out_p)), resident((1, d_out_p)),
    ]
    out_specs = batch_tile((tile_n, d_out_p))

    # VMEM budget: resident weights/biases + double-buffered in/out tiles
    # + activation temporaries, with 2x headroom; clamp for v7x's 64 MiB.
    itemsize = jnp.dtype(compute_dtype).itemsize
    weight_bytes = sum(int(a.size) * a.dtype.itemsize
                       for a in (w1p, b1p, w2p, b2p, w3p, b3p))
    io_tile_bytes = tile_n * d_in_p * itemsize + tile_n * d_out_p * 4
    act_bytes = 2 * tile_n * max(h_p, d_out_p) * 4
    vmem_limit = int(min(max(2 * (weight_bytes + 2 * io_tile_bytes + act_bytes),
                             32 * 1024 * 1024),
                         64 * 1024 * 1024))

    cost = pl.CostEstimate(
        flops=2 * n_p * (d_in_p * h_p + h_p * d_out_p + d_out_p * d_out_p),
        transcendentals=n_p * (h_p + d_out_p),          # erf per element
        bytes_accessed=(int(xp.size) * itemsize + weight_bytes
                        + n_p * d_out_p * 4),
    )

    out = pl.pallas_call(
        mlp_encoder_kernel,
        out_shape=jax.ShapeDtypeStruct((n_p, d_out_p), jnp.float32),
        grid=grid,
        in_specs=in_specs,
        out_specs=out_specs,
        compiler_params=pltpu.CompilerParams(
            dimension_semantics=("parallel",),
            vmem_limit_bytes=vmem_limit,
        ),
        cost_estimate=cost,
    )(xp, w1p, b1p, w2p, b2p, w3p, b3p)

    return out[:N, :d_out]


def init_params(key, d_in, d_out):
    """Deterministic init mimicking the module's parameter shapes.

    Linear weights stored pre-transposed as (in, out); PyTorch stores
    (out, in) and computes x @ W.T, so the math is identical.
    """
    h = d_out // 2
    keys = jax.random.split(key, 6)

    def lin(kw, kb, fan_in, fan_out):
        bound = 1.0 / jnp.sqrt(fan_in)
        w = jax.random.uniform(kw, (fan_in, fan_out), jnp.float32, -bound, bound)
        b = jax.random.uniform(kb, (1, fan_out), jnp.float32, -bound, bound)
        return w, b

    w1, b1 = lin(keys[0], keys[1], d_in, h)
    w2, b2 = lin(keys[2], keys[3], h, d_out)
    w3, b3 = lin(keys[4], keys[5], d_out, d_out)

    # BatchNorm1d params / running stats (PyTorch defaults), as (1, F) rows.
    g1, be1 = jnp.ones((1, h), jnp.float32), jnp.zeros((1, h), jnp.float32)
    m1, v1 = jnp.zeros((1, h), jnp.float32), jnp.ones((1, h), jnp.float32)
    g2, be2 = jnp.ones((1, d_out), jnp.float32), jnp.zeros((1, d_out), jnp.float32)
    m2, v2 = jnp.zeros((1, d_out), jnp.float32), jnp.ones((1, d_out), jnp.float32)

    return (w1, b1, g1, be1, m1, v1, w2, b2, g2, be2, m2, v2, w3, b3)


def reference_forward(x, params):
    # Pure-JAX f32 reference of the eval-mode forward (BN not folded).
    (w1, b1, g1, be1, m1, v1,
     w2, b2, g2, be2, m2, v2,
     w3, b3) = params
    h = x @ w1 + b1
    h = _gelu_exact(h)
    h = (h - m1) * lax.rsqrt(v1 + BN_EPS) * g1 + be1
    h = h @ w2 + b2
    h = _gelu_exact(h)
    h = (h - m2) * lax.rsqrt(v2 + BN_EPS) * g2 + be2
    return h @ w3 + b3


if __name__ == "__main__":
    d_in, d_out, N = 32, 128, 40   # hidden = 64; features pad to 128 lanes

    key = jax.random.PRNGKey(0)
    kx, kp = jax.random.split(key)
    x = jax.random.normal(kx, (N, d_in), jnp.float32)
    params = init_params(kp, d_in, d_out)

    ref = reference_forward(x, params)

    # f32 operands: exact (up to f32 rounding of the BN fold).
    out_f32 = mlp_encoder_forward(x, params, compute_dtype=jnp.float32, tile_n=16)
    out_f32 = jax.block_until_ready(out_f32)
    assert out_f32.shape == (N, d_out)
    assert jnp.allclose(out_f32, ref, atol=1e-5, rtol=1e-5), "f32 mismatch vs reference"

    # bf16 operands / f32 accumulation: looser tolerance vs the f32 reference.
    out_bf16 = mlp_encoder_forward(x, params, compute_dtype=jnp.bfloat16, tile_n=16)
    out_bf16 = jax.block_until_ready(out_bf16)
    assert jnp.allclose(out_bf16, ref, atol=5e-2, rtol=5e-2), "bf16 mismatch vs reference"

    print("KERNEL_OK")
</pallas_src>

<mosaic_0001>
module attributes {stable_mosaic.version = 11 : i64} {
  func.func @mlp_encoder_kernel(%arg0: i32, %arg1: memref<16x128xf32, #tpu.memory_space<vmem>>, %arg2: memref<128x128xf32, #tpu.memory_space<vmem>>, %arg3: memref<1x128xf32, #tpu.memory_space<vmem>>, %arg4: memref<128x128xf32, #tpu.memory_space<vmem>>, %arg5: memref<1x128xf32, #tpu.memory_space<vmem>>, %arg6: memref<128x128xf32, #tpu.memory_space<vmem>>, %arg7: memref<1x128xf32, #tpu.memory_space<vmem>>, %arg8: memref<16x128xf32, #tpu.memory_space<vmem>>) attributes {dimension_semantics = [#tpu.dimension_semantics<parallel>], iteration_bounds = array<i64: 3>, scalar_prefetch = 0 : i64, scratch_operands = 0 : i64, tpu.core_type = #tpu.core_type<tc>, window_params = [{transform_indices = @transform_0, window_bounds = array<i64: 16, 128>}, {pipeline_mode = #tpu.pipeline_mode<synchronous>, transform_indices = @transform_1, window_bounds = array<i64: 128, 128>}, {pipeline_mode = #tpu.pipeline_mode<synchronous>, transform_indices = @transform_2, window_bounds = array<i64: 1, 128>}, {pipeline_mode = #tpu.pipeline_mode<synchronous>, transform_indices = @transform_3, window_bounds = array<i64: 128, 128>}, {pipeline_mode = #tpu.pipeline_mode<synchronous>, transform_indices = @transform_4, window_bounds = array<i64: 1, 128>}, {pipeline_mode = #tpu.pipeline_mode<synchronous>, transform_indices = @transform_5, window_bounds = array<i64: 128, 128>}, {pipeline_mode = #tpu.pipeline_mode<synchronous>, transform_indices = @transform_6, window_bounds = array<i64: 1, 128>}, {transform_indices = @transform_7, window_bounds = array<i64: 16, 128>}]} {
    %c0 = arith.constant 0 : index
    %c0_0 = arith.constant 0 : index
    %0 = vector.load %arg1[%c0, %c0_0] : memref<16x128xf32, #tpu.memory_space<vmem>>, vector<16x128xf32>
    %c0_1 = arith.constant 0 : index
    %c0_2 = arith.constant 0 : index
    %1 = vector.load %arg2[%c0_1, %c0_2] : memref<128x128xf32, #tpu.memory_space<vmem>>, vector<128x128xf32>
    %cst = arith.constant dense<0.000000e+00> : vector<16x128xf32>
    %2 = tpu.matmul %0, %1, %cst {dimension_numbers = #tpu.dot_dimension_numbers<[1], [0], [0], [1], [0, 0, 1, 1], [], []>} : vector<16x128xf32>, vector<128x128xf32>, vector<16x128xf32> -> vector<16x128xf32>
    %c0_3 = arith.constant 0 : index
    %c0_4 = arith.constant 0 : index
    %3 = vector.load %arg3[%c0_3, %c0_4] : memref<1x128xf32, #tpu.memory_space<vmem>>, vector<1x128xf32>
    %4 = vector.broadcast %3 : vector<1x128xf32> to vector<16x128xf32>
    %5 = arith.addf %2, %4 : vector<16x128xf32>
    %cst_5 = arith.constant 5.000000e-01 : f32
    %6 = vector.broadcast %cst_5 : f32 to vector<16x128xf32>
    %7 = arith.mulf %6, %5 : vector<16x128xf32>
    %cst_6 = arith.constant 0.707106769 : f32
    %8 = vector.broadcast %cst_6 : f32 to vector<16x128xf32>
    %9 = arith.mulf %5, %8 : vector<16x128xf32>
    %10 = math.erf %9 : vector<16x128xf32>
    %cst_7 = arith.constant 1.000000e+00 : f32
    %11 = vector.broadcast %cst_7 : f32 to vector<16x128xf32>
    %12 = arith.addf %11, %10 : vector<16x128xf32>
    %13 = arith.mulf %7, %12 : vector<16x128xf32>
    %c0_8 = arith.constant 0 : index
    %c0_9 = arith.constant 0 : index
    %14 = vector.load %arg4[%c0_8, %c0_9] : memref<128x128xf32, #tpu.memory_space<vmem>>, vector<128x128xf32>
    %cst_10 = arith.constant dense<0.000000e+00> : vector<16x128xf32>
    %15 = tpu.matmul %13, %14, %cst_10 {dimension_numbers = #tpu.dot_dimension_numbers<[1], [0], [0], [1], [0, 0, 1, 1], [], []>} : vector<16x128xf32>, vector<128x128xf32>, vector<16x128xf32> -> vector<16x128xf32>
    %c0_11 = arith.constant 0 : index
    %c0_12 = arith.constant 0 : index
    %16 = vector.load %arg5[%c0_11, %c0_12] : memref<1x128xf32, #tpu.memory_space<vmem>>, vector<1x128xf32>
    %17 = vector.broadcast %16 : vector<1x128xf32> to vector<16x128xf32>
    %18 = arith.addf %15, %17 : vector<16x128xf32>
    %cst_13 = arith.constant 5.000000e-01 : f32
    %19 = vector.broadcast %cst_13 : f32 to vector<16x128xf32>
    %20 = arith.mulf %19, %18 : vector<16x128xf32>
    %cst_14 = arith.constant 0.707106769 : f32
    %21 = vector.broadcast %cst_14 : f32 to vector<16x128xf32>
    %22 = arith.mulf %18, %21 : vector<16x128xf32>
    %23 = math.erf %22 : vector<16x128xf32>
    %cst_15 = arith.constant 1.000000e+00 : f32
    %24 = vector.broadcast %cst_15 : f32 to vector<16x128xf32>
    %25 = arith.addf %24, %23 : vector<16x128xf32>
    %26 = arith.mulf %20, %25 : vector<16x128xf32>
    %c0_16 = arith.constant 0 : index
    %c0_17 = arith.constant 0 : index
    %27 = vector.load %arg6[%c0_16, %c0_17] : memref<128x128xf32, #tpu.memory_space<vmem>>, vector<128x128xf32>
    %cst_18 = arith.constant dense<0.000000e+00> : vector<16x128xf32>
    %28 = tpu.matmul %26, %27, %cst_18 {dimension_numbers = #tpu.dot_dimension_numbers<[1], [0], [0], [1], [0, 0, 1, 1], [], []>} : vector<16x128xf32>, vector<128x128xf32>, vector<16x128xf32> -> vector<16x128xf32>
    %c0_19 = arith.constant 0 : index
    %c0_20 = arith.constant 0 : index
    %29 = vector.load %arg7[%c0_19, %c0_20] : memref<1x128xf32, #tpu.memory_space<vmem>>, vector<1x128xf32>
    %30 = vector.broadcast %29 : vector<1x128xf32> to vector<16x128xf32>
    %31 = arith.addf %28, %30 : vector<16x128xf32>
    %c0_21 = arith.constant 0 : index
    %c0_22 = arith.constant 0 : index
    %32 = vector.load %arg8[%c0_21, %c0_22] : memref<16x128xf32, #tpu.memory_space<vmem>>, vector<16x128xf32>
    tpu.vector_store %arg8[%c0_21, %c0_22], %31 {strides = array<i32>} : memref<16x128xf32, #tpu.memory_space<vmem>>, vector<16x128xf32>,
    return
  }
  func.func @transform_0(%arg0: i32) -> (i32, i32) {
    %c0_i32 = arith.constant 0 : i32
    %c0_i32_0 = arith.constant 0 : i32
    return %arg0, %c0_i32 : i32, i32
  }
  func.func @transform_1(%arg0: i32) -> (i32, i32) {
    %c0_i32 = arith.constant 0 : i32
    %c0_i32_0 = arith.constant 0 : i32
    %c0_i32_1 = arith.constant 0 : i32
    return %c0_i32, %c0_i32_0 : i32, i32
  }
  func.func @transform_2(%arg0: i32) -> (i32, i32) {
    %c0_i32 = arith.constant 0 : i32
    %c0_i32_0 = arith.constant 0 : i32
    %c0_i32_1 = arith.constant 0 : i32
    return %c0_i32, %c0_i32_0 : i32, i32
  }
  func.func @transform_3(%arg0: i32) -> (i32, i32) {
    %c0_i32 = arith.constant 0 : i32
    %c0_i32_0 = arith.constant 0 : i32
    %c0_i32_1 = arith.constant 0 : i32
    return %c0_i32, %c0_i32_0 : i32, i32
  }
  func.func @transform_4(%arg0: i32) -> (i32, i32) {
    %c0_i32 = arith.constant 0 : i32
    %c0_i32_0 = arith.constant 0 : i32
    %c0_i32_1 = arith.constant 0 : i32
    return %c0_i32, %c0_i32_0 : i32, i32
  }
  func.func @transform_5(%arg0: i32) -> (i32, i32) {
    %c0_i32 = arith.constant 0 : i32
    %c0_i32_0 = arith.constant 0 : i32
    %c0_i32_1 = arith.constant 0 : i32
    return %c0_i32, %c0_i32_0 : i32, i32
  }
  func.func @transform_6(%arg0: i32) -> (i32, i32) {
    %c0_i32 = arith.constant 0 : i32
    %c0_i32_0 = arith.constant 0 : i32
    %c0_i32_1 = arith.constant 0 : i32
    return %c0_i32, %c0_i32_0 : i32, i32
  }
  func.func @transform_7(%arg0: i32) -> (i32, i32) {
    %c0_i32 = arith.constant 0 : i32
    %c0_i32_0 = arith.constant 0 : i32
    return %arg0, %c0_i32 : i32, i32
  }
}

</mosaic_0001>

<bundles_post_ra>
// kernel: tpu_custom_call.1
= control target key start
LH: loop header
LB: loop body
LE: loop exit
PB: predicated region body
PF: predicated region fallthrough
CT: control target
= control target key end

     0   :  { %s1376_s0 = inlined_call_operand.hbm [shape: f32[48,128], index: 0, kind: input, shape index: {}]   ;;  %s1377_s1 = inlined_call_operand.hbm [shape: f32[128,128], index: 1, kind: input, shape index: {}]   ;;  %s1378_s2 = inlined_call_operand.vmem [shape: f32[1,128], index: 2, kind: input, shape index: {}]   ;;  %s1379_s3 = inlined_call_operand.hbm [shape: f32[128,128], index: 3, kind: input, shape index: {}]   ;;  %s1380_s4 = inlined_call_operand.vmem [shape: f32[1,128], index: 4, kind: input, shape index: {}]   ;;  %s1381_s5 = inlined_call_operand.hbm [shape: f32[128,128], index: 5, kind: input, shape index: {}]   ;;  %s1382_s6 = inlined_call_operand.vmem [shape: f32[1,128], index: 6, kind: input, shape index: {}]   ;;  %s1383_s7 = inlined_call_operand.hbm [shape: f32[48,128], index: 7, kind: output, shape index: {}]  }
   0x1   :  { %1386 = sst [smem:[#allocation15_spill]] %s1377_s1 }
   0x2   :  { %12 = vsyncpa [#allocation3], 0 }
   0x3   :  { %14 = vsyncpa [#allocation3 + $0x1], 0 }
   0x4   :  { %15 = vsyncpa [#allocation6], 0 }
   0x5   :  { %16 = vsyncpa [#allocation9], 0 }
   0x6   :  { %17 = vsyncpa [#allocation4], 0 }
   0x7   :  { %19 = vsyncpa [#allocation4 + $0x1], 0  ;;  %s1155_s24 = smov 0   ;;  %s1157_s25 = smov 0  }
   0x8   :  { %s1159_s26 = smov 0   ;;  %s1161_s27 = smov 0  }
   0x9 LB: > { %s1176_s28 = sadd.s32 4294967295, %s1106_s27   ;;  %s778_s29 = sadd.s32 4294967294, %s1106_s27   ;;  %s1106_s27 = sphi %s1161_s27, %s1399_s27   ;;  %s1102_s26 = sphi %s1159_s26, %s1398_s26   ;;  %s1098_s25 = sphi %s1157_s25, %s1397_s25   ;;  %s1094_s24 = sphi %s1155_s24, %s1396_s24  }
   0xa   : > { %p45_p0 = scmp.ne.s32.totalorder %s1098_s25, %s1094_s24  ;;  %p46_p1 = scmp.eq.s32.totalorder %s1176_s28, 0 }
   0xb   : > { %p195_p2 = scmp.eq.s32.totalorder %s1176_s28, 2  ;;  %p201_p3 = scmp.eq.s32.totalorder %s778_s29, 2 }
   0xc   : > { %p1185_p4 = por %p46_p1, %p45_p0  ;;  %p779_p5 = scmp.ge.s32.totalorder %s1106_s27, 1 }
   0xd   : > { %p1190_p6 = por %p201_p3, %p45_p0  ;;  %p208_p7 = scmp.lt.s32.totalorder %s1106_s27, 4 }
   0xe   : > { %s1389_s1 = sld [smem:[#allocation15_spill]]  ;;  %s1108_s13 = smov [#allocation5]  }
   0xf   : > { %p1198_p8 = pnand %p779_p5, %p208_p7  ;;  %s221_s14 = sshll.u32 %s1108_s13, 4  ;;  %s222_s14 = int_to_ptr.vmem [resolvable:$true] %s221_s14 }
  0x10   : > { %s236_s18 = sshll.u32 %s1379_s3, 4  ;;  %s1384_s19 = smov 128   ;;  %s237_s18 = int_to_ptr.hbm [resolvable:$true] %s236_s18 }
  0x11   : > { %p836_p9 = pneg %p1198_p8  ;;  %s1385_s20 = smov 8  }
  0x12   : > { %s1111_s21 = smov [#allocation7]   ;;  %s253_s9 = sshll.u32 %s1381_s5, 4  ;;  %s254_s9 = int_to_ptr.hbm [resolvable:$true] %s253_s9 }
  0x13   : > { %p1206_p10 = pnand %p836_p9, %p46_p1  ;;  %s238_s22 = sshll.u32 %s1111_s21, 4  ;;  %s239_s22 = int_to_ptr.vmem [resolvable:$true] %s238_s22 }
  0x14   : > { %s219_s11 = sshll.u32 %s1389_s1, 4  ;;  %s1112_s10 = smov [#allocation8]   ;;  %s220_s11 = int_to_ptr.hbm [resolvable:$true] %s219_s11 }
  0x15   : > { %839 = dma.hbm_to_vmem [thread:$0]  (!%p1206_p10), %s220_s11, 2048, %s222_s14, [#allocation6], %s1384_s19, %s1384_s19, %s1385_s20  }
  0x16   : > { %842 = dma.hbm_to_vmem [thread:$0]  (!%p1206_p10), %s237_s18, 2048, %s239_s22, [#allocation6], %s1384_s19, %s1384_s19, %s1385_s20  }
  0x17   : > { %s255_s11 = sshll.u32 %s1112_s10, 4  ;;  %s1227_s13 = sadd.s32 1, %s1106_s27   ;;  %s256_s11 = int_to_ptr.vmem [resolvable:$true] %s255_s11 }
  0x18   : > { %845 = dma.hbm_to_vmem [thread:$0]  (!%p1206_p10), %s254_s9, 2048, %s256_s11, [#allocation9], %s1384_s19, %s1384_s19, %s1385_s20  }
  0x19   : > { %s29_s14 = ssub.s32 %s1106_s27, %s1227_s13  ;;  %s32_s16 = sadd.s32 1, %s1102_s26 }
  0x1a   : > { %p30_p11 = scmp.eq.s32.totalorder %s29_s14, 0  ;;  %p39_p12 = scmp.ne.s32.totalorder %s1102_s26, %s1098_s25 }
  0x1b   : > { %p40_p13 = scmp.eq.s32.totalorder %s1106_s27, 0  ;;  %p857_p3 = scmp.lt.s32.totalorder %s1106_s27, 3 }
  0x1c   : > { %s1241_s17 = scalar_select %p30_p11, %s1102_s26, %s32_s16  }
  0x1d   : > { %p1245_p0 = por %p195_p2, %p39_p12  ;;  %s272_s21 = sand.u32 1, %s1102_s26  }
  0x1e   : > { %s802_s15 = sshll.u32 %s1106_s27, 4  ;;  %p41_p5 = por %p40_p13, %p39_p12 }
  0x1f   : > { %s784_s22 = sshll.u32 %s272_s21, 4  ;;  %s281_s9 = scalar_lea.hbm %s1376_s0, %s802_s15 }
  0x20   : > { %s282_s10 = sshll.u32 %s281_s9, 4  ;;  %s276_s11 = scalar_lea.vmem [#allocation2], %s784_s22  ;;  %s283_s10 = int_to_ptr.hbm [resolvable:$true] %s282_s10 }
  0x21   : > { %s284_s14 = sshll.u32 %s276_s11, 4  ;;  %p1255_p7 = pnand %p857_p3, %p41_p5  ;;  %s285_s14 = int_to_ptr.vmem [resolvable:$true] %s284_s14 }
  0x22   : > { %s273_s19 = scalar_lea.sflag [#allocation3], %s272_s21  ;;  %s1002_s20 = sshra.s32 %s283_s10, 4  ;;  %s1003_s20 = int_to_ptr.hbm [resolvable:$true] %s1002_s20 }
  0x23   : > { %s1004_s1 = scalar_lea.hbm %s1003_s20, 16  ;;  %p1006_p9 = pneg %p1255_p7 }
  0x24   : > { %p1005_p2 = scmp.ne.s32.totalorder %s1003_s20, %s1004_s1  ;;  %s1009_s22 = scalar_lea.hbm %s1376_s0, 48 }
  0x25   : > { %p1010_p12 = scmp.lt.s32.totalorder %s1003_s20, %s1376_s0  ;;  %p1011_p13 = scmp.lt.s32.totalorder %s1009_s22, %s1004_s1 }
  0x26   : > { %p1007_p10 = pnand %p1006_p9, %p1005_p2 }
  0x27   : > { %p1012_p3 = por %p1011_p13, %p1010_p12 }
  0x28   : > { %p1008_p11 = pneg %p1007_p10 }
  0x2a   : > { %p1013_p5 = pnand %p1012_p3, %p1008_p11 }
  0x2c   : > { %1016 = shalt.err (!%p1013_p5)
}
  0x2d   : > { %s1394_s21 = smov 8   ;;  %s1395_s11 = smov 128  }
  0x2e   : > { %849 = dma.hbm_to_vmem [thread:$0]  (!%p1255_p7), %s283_s10, 256, %s285_s14, %s273_s19, %s1395_s11, %s1395_s11, %s1394_s21  }
  0x2f   : > { %296 = sbr.rel (%p1198_p8) target bundleno = 594 (0x252), region = 48  ;;  %s1275_s15 = sand.u32 (!%p1198_p8), 1, %s1098_s25  }
  0x30   : > { %s788_s1 = sshll.u32 (!%p1198_p8), %s1275_s15, 4  ;;  %s299_s20 = scalar_lea.sflag (!%p1198_p8), [#allocation3], %s1275_s15 }
  0x31   : > { %s1281_s23 = scalar_lea.vmem (!%p1198_p8), [#allocation2], %s788_s1 }
  0x34   : > { %1077 = dma.done.wait (%p1185_p4), %s299_s20, 256  }
  0x35   : > { %1079 = vsyncadd (%p1185_p4), %s299_s20, 4294967040 }
  0x36   : > { %1081 = dma.done.wait (%p46_p1), [#allocation6], 4096  }
  0x37   : > { %1083 = vsyncadd (%p46_p1), [#allocation6], 4294963200 }
  0x38   : > { %1085 = dma.done.wait (%p46_p1), [#allocation9], 2048  }
  0x39   : > { %1087 = vsyncadd (%p46_p1), [#allocation9], 4294965248  ;;  %v368_v0 = vld [vmem:[#allocation5 + $0x78] sm:$0xff]  ;;  %v367_v1 = vld [vmem:[#allocation5 + $0x70] sm:$0xff]  ;;  %s803_s22 = sshll.u32 %s1176_s28, 4  ;;  %s348_s11 = scalar_lea.vmem [#allocation10], %s788_s1 }
  0x3a   : > { %373 = vmatpush.msra.mxu0 %v368_v0  ;;  %804 = vmatpush.msra.mxu3 %v368_v0  ;;  %v366_v2 = vld [vmem:[#allocation5 + $0x68] sm:$0xff]  ;;  %v365_v3 = vld [vmem:[#allocation5 + $0x60] sm:$0xff]  ;;  %v364_v4 = vld [vmem:[#allocation5 + $0x58] sm:$0xff]  ;;  %s672_s21 = scalar_lea.hbm %s1383_s7, %s803_s22  ;;  %s673_s20 = sshll.u32 %s348_s11, 4  ;;  %s674_s20 = int_to_ptr.vmem [resolvable:$true] %s673_s20 }
  0x3b   : > { %v363_v5 = vld [vmem:[#allocation5 + $0x50] sm:$0xff]  ;;  %v362_v6 = vld [vmem:[#allocation5 + $0x48] sm:$0xff]  ;;  %v361_v7 = vld [vmem:[#allocation5 + $0x40] sm:$0xff]  ;;  %s661_s30 = scalar_lea.sflag [#allocation4], %s1275_s15  ;;  %s1052_s1 = scalar_lea.hbm %s1383_s7, 48 }
  0x3c   : > { %374 = vmatpush.msra.mxu0 %v367_v1  ;;  %805 = vmatpush.msra.mxu3 %v367_v1  ;;  %v360_v8 = vld [vmem:[#allocation5 + $0x38] sm:$0xff]  ;;  %v359_v9 = vld [vmem:[#allocation5 + $0x30] sm:$0xff]  ;;  %v358_v10 = vld [vmem:[#allocation5 + $0x28] sm:$0xff] }
  0x3d   : > { %v357_v11 = vld [vmem:[#allocation5 + $0x20] sm:$0xff]  ;;  %v356_v12 = vld [vmem:[#allocation5 + $0x18] sm:$0xff]  ;;  %v355_v13 = vld [vmem:[#allocation5 + $0x10] sm:$0xff] }
  0x3e   : > { %375 = vmatpush.msra.mxu0 %v366_v2  ;;  %806 = vmatpush.msra.mxu3 %v366_v2  ;;  %v354_v14 = vld [vmem:[#allocation5 + $0x8] sm:$0xff]  ;;  %v353_v15 = vld [vmem:[#allocation5] sm:$0xff]  ;;  %v499_v18 = vld [vmem:[#allocation7 + $0x78] sm:$0xff] }
  0x3f   : > { %v351_v16 = vld [vmem:[%s1281_s23] sm:$0xff]  ;;  %v352_v17 = vld [vmem:[%s1281_s23 + $0x8] sm:$0xff]  ;;  %504 = vmatpush.msra.mxu1 %v499_v18  ;;  %s675_s23 = sshll.u32 %s672_s21, 4  ;;  %s676_s23 = int_to_ptr.hbm [resolvable:$true] %s675_s23 }
  0x40   : > { %376 = vmatpush.msra.mxu0 %v365_v3  ;;  %807 = vmatpush.msra.mxu3 %v365_v3  ;;  %v498_v19 = vld [vmem:[#allocation7 + $0x70] sm:$0xff]  ;;  %v497_v20 = vld [vmem:[#allocation7 + $0x68] sm:$0xff]  ;;  %v496_v21 = vld [vmem:[#allocation7 + $0x60] sm:$0xff]  ;;  %s1046_s12 = sshra.s32 %s676_s23, 4  ;;  %s1047_s12 = int_to_ptr.hbm [resolvable:$true] %s1046_s12 }
  0x41   : > { %505 = vmatpush.msra.mxu1 %v498_v19  ;;  %v901_v22 = vld [vmem:[%s1378_s2] ss:$0 sm:$0xff]  ;;  %v495_v23 = vld [vmem:[#allocation7 + $0x58] sm:$0xff]  ;;  %v494_v25 = vld [vmem:[#allocation7 + $0x50] sm:$0xff]  ;;  %s1048_s28 = scalar_lea.hbm %s1047_s12, 16  ;;  %p1053_p7 = scmp.lt.s32.totalorder %s1047_s12, %s1383_s7 }
  0x42   : > { %377 = vmatpush.msra.mxu0 %v364_v4  ;;  %808 = vmatpush.msra.mxu3 %v364_v4  ;;  %v493_v27 = vld [vmem:[#allocation7 + $0x48] sm:$0xff]  ;;  %v492_v29 = vld [vmem:[#allocation7 + $0x40] sm:$0xff]  ;;  %v491_v30 = vld [vmem:[#allocation7 + $0x38] sm:$0xff]  ;;  %p1049_p1 = scmp.ne.s32.totalorder %s1047_s12, %s1048_s28  ;;  %p1054_p2 = scmp.lt.s32.totalorder %s1052_s1, %s1048_s28 }
  0x43   : > { %506 = vmatpush.msra.mxu1 %v497_v20  ;;  %v490_v33 = vld [vmem:[#allocation7 + $0x30] sm:$0xff]  ;;  %v489_v36 = vld [vmem:[#allocation7 + $0x28] sm:$0xff]  ;;  %v488_v39 = vld [vmem:[#allocation7 + $0x20] sm:$0xff] }
  0x44   : > { %378 = vmatpush.msra.mxu0 %v363_v5  ;;  %809 = vmatpush.msra.mxu3 %v363_v5  ;;  %v487_v43 = vld [vmem:[#allocation7 + $0x18] sm:$0xff]  ;;  %v486_v47 = vld [vmem:[#allocation7 + $0x10] sm:$0xff]  ;;  %v485_v52 = vld [vmem:[#allocation7 + $0x8] sm:$0xff]  ;;  %p1050_p4 = pnand %p1049_p1, %p1245_p0  ;;  %p1055_p9 = por %p1054_p2, %p1053_p7 }
  0x45   : > { %507 = vmatpush.msra.mxu1 %v496_v21  ;;  %v484_v56 = vld [vmem:[#allocation7] sm:$0xff] }
  0x46   : > { %379 = vmatpush.msra.mxu0 %v362_v6  ;;  %810 = vmatpush.msra.mxu3 %v362_v6  ;;  %p1051_p8 = pneg %p1050_p4 }
  0x47   : > { %508 = vmatpush.msra.mxu1 %v495_v23 }
  0x48   : > { %380 = vmatpush.msra.mxu0 %v361_v7  ;;  %811 = vmatpush.msra.mxu3 %v361_v7  ;;  %p1056_p10 = pnand %p1055_p9, %p1051_p8 }
  0x49   : > { %509 = vmatpush.msra.mxu1 %v494_v25 }
  0x4a   : > { %381 = vmatpush.msra.mxu0 %v360_v8  ;;  %812 = vmatpush.msra.mxu3 %v360_v8 }
  0x4b   : > { %510 = vmatpush.msra.mxu1 %v493_v27 }
  0x4c   : > { %382 = vmatpush.msra.mxu0 %v359_v9  ;;  %813 = vmatpush.msra.mxu3 %v359_v9 }
  0x4d   : > { %511 = vmatpush.msra.mxu1 %v492_v29 }
  0x4e   : > { %383 = vmatpush.msra.mxu0 %v358_v10  ;;  %814 = vmatpush.msra.mxu3 %v358_v10 }
  0x4f   : > { %512 = vmatpush.msra.mxu1 %v491_v30 }
  0x50   : > { %384 = vmatpush.msra.mxu0 %v357_v11  ;;  %815 = vmatpush.msra.mxu3 %v357_v11 }
  0x51   : > { %513 = vmatpush.msra.mxu1 %v490_v33 }
  0x52   : > { %385 = vmatpush.msra.mxu0 %v356_v12  ;;  %816 = vmatpush.msra.mxu3 %v356_v12 }
  0x53   : > { %514 = vmatpush.msra.mxu1 %v489_v36 }
  0x54   : > { %386 = vmatpush.msra.mxu0 %v355_v13  ;;  %817 = vmatpush.msra.mxu3 %v355_v13 }
  0x55   : > { %515 = vmatpush.msra.mxu1 %v488_v39 }
  0x56   : > { %387 = vmatpush.msra.mxu0 %v354_v14  ;;  %818 = vmatpush.msra.mxu3 %v354_v14 }
  0x57   : > { %516 = vmatpush.msra.mxu1 %v487_v43 }
  0x58   : > { %388 = vmatpush.msra.mxu0 %v353_v15  ;;  %819 = vmatpush.msra.mxu3 %v353_v15 }
  0x59   : > { %389 = vmatmul.f32.vlgmr.msra.gmra.mxu0 %v351_v16  ;;  %392 = vmatmul.f32.vlgmr.msra.gmra.mxu3 %v352_v17 }
  0x5a   : > { %517 = vmatpush.msra.mxu1 %v486_v47 }
  0x5c   : > { %518 = vmatpush.msra.mxu1 %v485_v52 }
  0x5e   : > { %519 = vmatpush.msra.mxu1 %v484_v56  ;;  %v630_v56 = vld [vmem:[#allocation8 + $0x78] sm:$0xff] }
  0x5f   : > { %635 = vmatpush.msra.mxu2 %v630_v56 }
  0xd6   : > { %v390_v24 = vpop.f32.mrf.mxu0 }
  0xd7   : > { %v1300_v26 = vadd.f32 %v901_v22, %v390_v24 }
  0xd9   : > { %v1303_v28 = vmul.f32 0.70710677, %v1300_v26  ;;  %v396_v47 = vmul.f32 0.5, %v1300_v26  ;;  %v902_v26 = vld [vmem:[%s1380_s4] ss:$0 sm:$0xff] }
  0xdb   : > { %v400_v31 = vmul.f32 %v1303_v28, %v1303_v28 }
  0xdc   : > { %v393_v32 = vpop.f32.mrf.mxu3 }
  0xdd   : > { %v401_v34 = vmin.f32 %v400_v31, 16.0  ;;  %v1307_v35 = vadd.f32 %v901_v22, %v393_v32 }
  0xdf   : > { %v402_v37 = vmul.f32 2.1237322e-06, %v401_v34  ;;  %v1310_v38 = vmul.f32 0.70710677, %v1307_v35  ;;  %v413_v40 = vmul.f32 3.8918573e-05, %v401_v34 }
  0xe1   : > { %v403_v41 = vadd.f32 0.00028619796, %v402_v37  ;;  %v440_v42 = vmul.f32 %v1310_v38, %v1310_v38  ;;  %v414_v44 = vadd.f32 0.001143296, %v413_v40 }
  0xe3   : > { %v404_v45 = vmul.f32 %v403_v41, %v401_v34  ;;  %v441_v46 = vmin.f32 %v440_v42, 16.0  ;;  %v415_v48 = vmul.f32 %v414_v44, %v401_v34 }
  0xe5   : > { %v442_v49 = vmul.f32 2.1237322e-06, %v441_v46  ;;  %v453_v50 = vmul.f32 3.8918573e-05, %v441_v46  ;;  %v405_v51 = vadd.f32 0.0036580483, %v404_v45 }
  0xe6   : > { %v416_v53 = vadd.f32 0.014752088, %v415_v48 }
  0xe7   : > { %v443_v54 = vadd.f32 0.00028619796, %v442_v49  ;;  %v454_v55 = vadd.f32 0.001143296, %v453_v50  ;;  %v406_v60 = vmul.f32 %v405_v51, %v401_v34 }
  0xe8   : > { %v417_v57 = vmul.f32 %v416_v53, %v401_v34 }
  0xe9   : > { %v444_v58 = vmul.f32 %v443_v54, %v441_v46  ;;  %v455_v59 = vmul.f32 %v454_v55, %v441_v46  ;;  %v407_v2 = vadd.f32 0.05243302, %v406_v60  ;;  %v397_v54 = vmul.f32 0.5, %v1307_v35  ;;  %v624_v35 = vld [vmem:[#allocation8 + $0x48] sm:$0xff] }
  0xea   : > { %v418_v61 = vadd.f32 0.112945676, %v417_v57  ;;  %v629_v57 = vld [vmem:[#allocation8 + $0x70] sm:$0xff] }
  0xeb   : > { %v445_v62 = vadd.f32 0.0036580483, %v444_v58  ;;  %v456_v63 = vadd.f32 0.014752088, %v455_v59  ;;  %v408_v8 = vmul.f32 %v407_v2, %v401_v34  ;;  %636 = vmatpush.msra.mxu2 %v629_v57  ;;  %v627_v58 = vld [vmem:[#allocation8 + $0x60] sm:$0xff]  ;;  %v626_v59 = vld [vmem:[#allocation8 + $0x58] sm:$0xff] }
  0xec   : > { %v419_v0 = vmul.f32 %v418_v61, %v401_v34  ;;  %v625_v61 = vld [vmem:[#allocation8 + $0x50] sm:$0xff]  ;;  %v622_v2 = vld [vmem:[#allocation8 + $0x38] sm:$0xff] }
  0xed   : > { %v457_v1 = vmul.f32 %v456_v63, %v441_v46  ;;  %v446_v4 = vmul.f32 %v445_v62, %v441_v46  ;;  %v409_v13 = vadd.f32 0.18741608, %v408_v8 }
  0xee   : > { %v420_v3 = vadd.f32 0.4994258, %v419_v0  ;;  %v623_v0 = vld [vmem:[#allocation8 + $0x40] sm:$0xff] }
  0xef   : > { %v458_v5 = vadd.f32 0.112945676, %v457_v1  ;;  %v447_v10 = vadd.f32 0.05243302, %v446_v4  ;;  %v410_v17 = vmul.f32 %v409_v13, %v401_v34  ;;  %v618_v13 = vld [vmem:[#allocation8 + $0x18] sm:$0xff] }
  0xf0   : > { %v421_v6 = vmul.f32 %v420_v3, %v401_v34  ;;  %v621_v3 = vld [vmem:[#allocation8 + $0x30] sm:$0xff] }
  0xf1   : > { %v459_v7 = vmul.f32 %v458_v5, %v441_v46  ;;  %v448_v14 = vmul.f32 %v447_v10, %v441_v46  ;;  %v411_v21 = vadd.f32 1.1283791, %v410_v17  ;;  %v619_v10 = vld [vmem:[#allocation8 + $0x20] sm:$0xff]  ;;  %v617_v17 = vld [vmem:[#allocation8 + $0x10] sm:$0xff] }
  0xf2   : > { %v422_v9 = vadd.f32 1.0, %v421_v6  ;;  %v620_v6 = vld [vmem:[#allocation8 + $0x28] sm:$0xff] }
  0xf3   : > { %v460_v11 = vadd.f32 0.4994258, %v459_v7  ;;  %v449_v18 = vadd.f32 0.18741608, %v448_v14  ;;  %v412_v31 = vmul.f32 %v411_v21, %v1303_v28 }
  0xf4   : > { %904 = vrcp.f32 %v422_v9  ;;  %v434_v22 = vand.u32 2147483648, %v422_v9  ;;  %v432_v27 = vand.u32 2147483647, %v422_v9  ;;  %vm428_vm1 = vweird.f32 %v422_v9 }
  0xf5   : > { %v461_v12 = vmul.f32 %v460_v11, %v441_v46  ;;  %v450_v24 = vmul.f32 %v449_v18, %v441_v46 }
  0xf6   : > { %v435_v32 = vor.u32 1.1754944e-38, %v434_v22  ;;  %vm433_vm3 = vcmp.eq.f32.partialorder %v432_v27, 8.507059e+37 }
  0xf7   : > { %v462_v15 = vadd.f32 1.0, %v461_v12  ;;  %v451_v36 = vadd.f32 1.1283791, %v450_v24 }
  0xf9   : > { %906 = vrcp.f32 %v462_v15  ;;  %v474_v37 = vand.u32 2147483648, %v462_v15  ;;  %v472_v41 = vand.u32 2147483647, %v462_v15  ;;  %vm468_vm5 = vweird.f32 %v462_v15 }
  0xfa   : > { %v905_v16 = vpop.eup %904  ;;  %v452_v46 = vmul.f32 %v451_v36, %v1310_v38  ;;  %v628_v38 = vld [vmem:[#allocation8 + $0x68] sm:$0xff] }
  0xfb   : > { %v424_v19 = vmul.f32 %v905_v16, %v422_v9  ;;  %vm429_vm0 = vweird.f32 %v905_v16  ;;  %v475_v45 = vor.u32 1.1754944e-38, %v474_v37  ;;  %vm473_vm7 = vcmp.eq.f32.partialorder %v472_v41, 8.507059e+37  ;;  %637 = vmatpush.msra.mxu2 %v628_v38 }
  0xfc   : > { %vm430_vm2 = vmor %vm428_vm1, %vm429_vm0 }
  0xfd   : > { %v425_v20 = vsub.f32 1.0, %v424_v19  ;;  %638 = vmatpush.msra.mxu2 %v627_v58 }
  0xff   : > { %v907_v23 = vpop.eup %906  ;;  %v426_v25 = vmul.f32 %v905_v16, %v425_v20  ;;  %639 = vmatpush.msra.mxu2 %v626_v59  ;;  %v616_v20 = vld [vmem:[#allocation8 + $0x8] sm:$0xff] }
 0x100   : > { %v464_v29 = vmul.f32 %v907_v23, %v462_v15  ;;  %vm469_vm4 = vweird.f32 %v907_v23 }
 0x101   : > { %v427_v30 = vadd.f32 %v905_v16, %v426_v25  ;;  %vm470_vm6 = vmor %vm468_vm5, %vm469_vm4  ;;  %640 = vmatpush.msra.mxu2 %v625_v61  ;;  %v615_v25 = vld [vmem:[#allocation8] sm:$0xff] }
 0x102   : > { %v465_v33 = vsub.f32 1.0, %v464_v29 }
 0x103   : > { %v431_v34 = vsel %vm430_vm2, %v905_v16, %v427_v30  ;;  %641 = vmatpush.msra.mxu2 %v624_v35 }
 0x104   : > { %v436_v39 = vsel %vm433_vm3, %v435_v32, %v431_v34  ;;  %v466_v40 = vmul.f32 %v907_v23, %v465_v33 }
 0x105   : > { %v437_v42 = vmul.f32 %v436_v39, %v412_v31  ;;  %642 = vmatpush.msra.mxu2 %v623_v0 }
 0x106   : > { %v467_v43 = vadd.f32 %v907_v23, %v466_v40 }
 0x107   : > { %v793_v44 = vclamps-f32 %v437_v42, 1.0  ;;  %643 = vmatpush.msra.mxu2 %v622_v2 }
 0x108   : > { %v471_v28 = vsel %vm470_vm6, %v907_v23, %v467_v43 }
 0x109   : > { %v480_v48 = vadd.f32 1.0, %v793_v44  ;;  %v476_v49 = vsel %vm473_vm7, %v475_v45, %v471_v28  ;;  %644 = vmatpush.msra.mxu2 %v621_v3 }
 0x10a   : > { %v477_v50 = vmul.f32 %v476_v49, %v452_v46 }
 0x10b   : > { %v482_v51 = vmul.f32 %v480_v48, %v396_v47  ;;  %645 = vmatpush.msra.mxu2 %v620_v6 }
 0x10c   : > { %v794_v52 = vclamps-f32 %v477_v50, 1.0 }
 0x10d   : > { %520 = vmatmul.f32.vlgmr.msra.gmra.mxu1 %v482_v51  ;;  %646 = vmatpush.msra.mxu2 %v619_v10 }
 0x10e   : > { %v481_v53 = vadd.f32 1.0, %v794_v52 }
 0x10f   : > { %647 = vmatpush.msra.mxu2 %v618_v13 }
 0x110   : > { %v483_v55 = vmul.f32 %v481_v53, %v397_v54 }
 0x111   : > { %648 = vmatpush.msra.mxu2 %v617_v17 }
 0x113   : > { %649 = vmatpush.msra.mxu2 %v616_v20 }
 0x115   : > { %523 = vmatmul.f32.gmra.mxu1 %v483_v55  ;;  %650 = vmatpush.msra.mxu2 %v615_v25 }
 0x18a   : > { %v521_v60 = vpop.f32.mrf.mxu1 }
 0x18b   : > { %v1321_v62 = vadd.f32 %v902_v26, %v521_v60 }
 0x18d   : > { %v1324_v63 = vmul.f32 0.70710677, %v1321_v62 }
 0x18f   : > { %v531_v1 = vmul.f32 %v1324_v63, %v1324_v63 }
 0x191   : > { %v532_v4 = vmin.f32 %v531_v1, 16.0 }
 0x192   : > { %v524_v5 = vpop.f32.mrf.mxu1 }
 0x193   : > { %v533_v7 = vmul.f32 2.1237322e-06, %v532_v4  ;;  %v1328_v8 = vadd.f32 %v902_v26, %v524_v5  ;;  %v544_v9 = vmul.f32 3.8918573e-05, %v532_v4 }
 0x195   : > { %v534_v11 = vadd.f32 0.00028619796, %v533_v7  ;;  %v1331_v12 = vmul.f32 0.70710677, %v1328_v8  ;;  %v545_v14 = vadd.f32 0.001143296, %v544_v9 }
 0x197   : > { %v535_v15 = vmul.f32 %v534_v11, %v532_v4  ;;  %v571_v16 = vmul.f32 %v1331_v12, %v1331_v12  ;;  %v546_v18 = vmul.f32 %v545_v14, %v532_v4 }
 0x199   : > { %v572_v19 = vmin.f32 %v571_v16, 16.0  ;;  %v547_v21 = vadd.f32 0.014752088, %v546_v18  ;;  %v536_v22 = vadd.f32 0.0036580483, %v535_v15  ;;  %v527_v16 = vmul.f32 0.5, %v1321_v62 }
 0x19a   : > { %v903_v62 = vld [vmem:[%s1382_s6] ss:$0 sm:$0xff] }
 0x19b   : > { %v573_v23 = vmul.f32 2.1237322e-06, %v572_v19  ;;  %v584_v24 = vmul.f32 3.8918573e-05, %v572_v19  ;;  %v548_v27 = vmul.f32 %v547_v21, %v532_v4  ;;  %v537_v32 = vmul.f32 %v536_v22, %v532_v4 }
 0x19d   : > { %v574_v29 = vadd.f32 0.00028619796, %v573_v23  ;;  %v585_v30 = vadd.f32 0.001143296, %v584_v24  ;;  %v549_v31 = vadd.f32 0.112945676, %v548_v27 }
 0x19e   : > { %v538_v41 = vadd.f32 0.05243302, %v537_v32  ;;  %v528_v24 = vmul.f32 0.5, %v1328_v8 }
 0x19f   : > { %v575_v33 = vmul.f32 %v574_v29, %v572_v19  ;;  %v586_v36 = vmul.f32 %v585_v30, %v572_v19  ;;  %v550_v34 = vmul.f32 %v549_v31, %v532_v4 }
 0x1a0   : > { %v539_v28 = vmul.f32 %v538_v41, %v532_v4 }
 0x1a1   : > { %v587_v37 = vadd.f32 0.014752088, %v586_v36  ;;  %v576_v39 = vadd.f32 0.0036580483, %v575_v33  ;;  %v551_v40 = vadd.f32 0.4994258, %v550_v34 }
 0x1a2   : > { %v540_v50 = vadd.f32 0.18741608, %v539_v28 }
 0x1a3   : > { %v588_v42 = vmul.f32 %v587_v37, %v572_v19  ;;  %v552_v43 = vmul.f32 %v551_v40, %v532_v4  ;;  %v577_v45 = vmul.f32 %v576_v39, %v572_v19 }
 0x1a4   : > { %v541_v55 = vmul.f32 %v540_v50, %v532_v4 }
 0x1a5   : > { %v589_v44 = vadd.f32 0.112945676, %v588_v42  ;;  %v553_v46 = vadd.f32 1.0, %v552_v43  ;;  %v578_v49 = vadd.f32 0.05243302, %v577_v45 }
 0x1a6   : > { %v542_v26 = vadd.f32 1.1283791, %v541_v55 }
 0x1a7   : > { %v590_v47 = vmul.f32 %v589_v44, %v572_v19  ;;  %908 = vrcp.f32 %v553_v46  ;;  %v579_v54 = vmul.f32 %v578_v49, %v572_v19  ;;  %v565_v58 = vand.u32 2147483648, %v553_v46 }
 0x1a8   : > { %v563_v60 = vand.u32 2147483647, %v553_v46  ;;  %vm559_vm9 = vweird.f32 %v553_v46  ;;  %v543_v3 = vmul.f32 %v542_v26, %v1324_v63 }
 0x1a9   : > { %v591_v48 = vadd.f32 0.4994258, %v590_v47  ;;  %v580_v38 = vadd.f32 0.18741608, %v579_v54  ;;  %v566_v1 = vor.u32 1.1754944e-38, %v565_v58 }
 0x1aa   : > { %vm564_vm11 = vcmp.eq.f32.partialorder %v563_v60, 8.507059e+37 }
 0x1ab   : > { %v592_v51 = vmul.f32 %v591_v48, %v572_v19  ;;  %v581_v0 = vmul.f32 %v580_v38, %v572_v19 }
 0x1ad   : > { %v593_v52 = vadd.f32 1.0, %v592_v51  ;;  %v909_v53 = vpop.eup %908  ;;  %v582_v10 = vadd.f32 1.1283791, %v581_v0 }
 0x1ae   : > { %v555_v56 = vmul.f32 %v909_v53, %v553_v46  ;;  %vm560_vm8 = vweird.f32 %v909_v53 }
 0x1af   : > { %910 = vrcp.f32 %v593_v52  ;;  %vm561_vm10 = vmor %vm559_vm9, %vm560_vm8  ;;  %v605_v9 = vand.u32 2147483648, %v593_v52  ;;  %v603_v13 = vand.u32 2147483647, %v593_v52  ;;  %vm599_vm13 = vweird.f32 %v593_v52 }
 0x1b0   : > { %v556_v57 = vsub.f32 1.0, %v555_v56  ;;  %v583_v63 = vmul.f32 %v582_v10, %v1331_v12 }
 0x1b1   : > { %v606_v18 = vor.u32 1.1754944e-38, %v605_v9  ;;  %vm604_vm15 = vcmp.eq.f32.partialorder %v603_v13, 8.507059e+37 }
 0x1b2   : > { %v557_v59 = vmul.f32 %v909_v53, %v556_v57 }
 0x1b4   : > { %v558_v35 = vadd.f32 %v909_v53, %v557_v59 }
 0x1b5   : > { %v911_v61 = vpop.eup %910 }
 0x1b6   : > { %v595_v2 = vmul.f32 %v911_v61, %v593_v52  ;;  %v562_v5 = vsel %vm561_vm10, %v909_v53, %v558_v35  ;;  %vm600_vm12 = vweird.f32 %v911_v61 }
 0x1b7   : > { %v567_v4 = vsel %vm564_vm11, %v566_v1, %v562_v5  ;;  %vm601_vm14 = vmor %vm599_vm13, %vm600_vm12 }
 0x1b8   : > { %v596_v6 = vsub.f32 1.0, %v595_v2  ;;  %v568_v7 = vmul.f32 %v567_v4, %v543_v3 }
 0x1ba   : > { %v597_v11 = vmul.f32 %v911_v61, %v596_v6  ;;  %v795_v14 = vclamps-f32 %v568_v7, 1.0 }
 0x1bc   : > { %v598_v15 = vadd.f32 %v911_v61, %v597_v11  ;;  %v611_v17 = vadd.f32 1.0, %v795_v14 }
 0x1be   : > { %v602_v19 = vsel %vm601_vm14, %v911_v61, %v598_v15  ;;  %v613_v20 = vmul.f32 %v611_v17, %v527_v16 }
 0x1bf   : > { %v607_v21 = vsel %vm604_vm15, %v606_v18, %v602_v19 }
 0x1c0   : > { %v608_v22 = vmul.f32 %v607_v21, %v583_v63  ;;  %651 = vmatmul.f32.vlgmr.msra.gmra.mxu2 %v613_v20 }
 0x1c2   : > { %v796_v23 = vclamps-f32 %v608_v22, 1.0 }
 0x1c4   : > { %v612_v25 = vadd.f32 1.0, %v796_v23 }
 0x1c6   : > { %v614_v27 = vmul.f32 %v612_v25, %v528_v24 }
 0x1c8   : > { %654 = vmatmul.f32.gmra.mxu2 %v614_v27 }
 0x243   : > { %v652_v12 = vpop.f32.mrf.mxu2 }
 0x244   : > { %v653_v29 = vadd.f32 %v903_v62, %v652_v12 }
 0x246   : > { %658 = vst [vmem:[%s348_s11] sm:$0xff] %v653_v29 }
 0x24b   : > { %v655_v8 = vpop.f32.mrf.mxu2 }
 0x24c   : > { %v656_v30 = vadd.f32 %v903_v62, %v655_v8 }
 0x24e   : > { %659 = vst [vmem:[%s348_s11 + $0x8] sm:$0xff] %v656_v30 }
 0x24f   : > { %1059 = shalt.err (!%p1056_p10)
}
 0x250   : > { %s1113_s15 = smov 128   ;;  %s1114_s22 = smov 8  }
 0x251   : > { %834 = dma.vmem_to_hbm [thread:$0]  (%p1245_p0), %s674_s20, 256, %s676_s23, %s661_s30, %s1113_s15, %s1113_s15, %s1114_s22  }
 0x252 PF: > { %p861_p11 = scmp.ge.s32.totalorder %s1106_s27, 2  ;;  %s690_s29 = sand.u32 1, %s1094_s24  }
 0x253   : > { %s691_s9 = scalar_lea.sflag [#allocation4], %s690_s29 }
 0x254   : > { %p851_p12 = pnand %p861_p11, %p1190_p6 }
 0x256   : > { %p852_p13 = pneg %p851_p12 }
 0x258   : > { %1089 = dma.done.wait (%p852_p13), %s691_s9, 256  }
 0x259   : > { %1091 = vsyncadd (%p852_p13), %s691_s9, 4294967040  ;;  %p22_p3 = scmp.ge.s32.totalorder %s1227_s13, 5   ;;  %s1396_s24 = smov %s1098_s25 }
 0x25a   : > { %s1397_s25 = smov %s1102_s26  ;;  %s1398_s26 = smov %s1241_s17 }
 0x25b   : > { %s1399_s27 = smov %s1227_s13  ;;  %24 = sbr.rel (!%p22_p3) target bundleno = 9 (0x9), region = 105 }
 0x260   :  { %697 = vsyncpa [#allocation3], 1 }
 0x261   :  { %699 = vsyncpa [#allocation3 + $0x1], 1 }
 0x262   :  { %700 = vsyncpa [#allocation6], 1 }
 0x263   :  { %701 = vsyncpa [#allocation9], 1 }
 0x264   :  { %702 = vsyncpa [#allocation4], 1 }
 0x265   :  { %704 = vsyncpa [#allocation4 + $0x1], 1 }

</bundles_post_ra>
